<compile_context>
chip_gen: v7x
topology: tpu7x:2x2x1
jax: 0.10.0
libtpu: 0.0.40
codegen_flags: <defaults>
</compile_context>

<pallas_src>
import functools
import math

import jax
import jax.numpy as jnp
from jax.experimental import pallas as pl
from jax.experimental.pallas import tpu as pltpu


def _round_up(x, m):
    return ((x + m - 1) // m) * m


# ----------------------------- Pallas kernel ------------------------------ #
def _s2gc_hop_kernel(s_ref, feat_ref, sum_ref,      # inputs
                     h_out_ref, out_ref,            # outputs
                     acc_ref,                       # scratch
                     *, combine_scale, feat_resident):
    """One S2GC propagation hop at grid step (row tile r, contraction tile c).

    h_r      = (S @ feat)[rows r]        (fp32 MXU accumulation over c)
    h_out[r] = h_r                        (bf16, input of the next hop)
    out[r]   = sum_prev[r] + (1-alpha)/k * h_r
               (running combined result; after the last hop this IS the final
                S2GC output since sum was initialised to alpha * X)
    """
    c = pl.program_id(1)                 # contraction (neighbor) tile index

    @pl.when(c == 0)
    def _():
        acc_ref[...] = jnp.zeros_like(acc_ref)

    if feat_resident:
        # Full feature matrix is VMEM-resident; slice the contraction window.
        tk = s_ref.shape[1]
        start = pl.multiple_of(c * tk, tk)
        rhs = feat_ref[pl.ds(start, tk), :]
    else:
        # Feature tile is streamed/double-buffered by the BlockSpec pipeline.
        rhs = feat_ref[...]

    acc_ref[...] += jnp.dot(s_ref[...], rhs, preferred_element_type=jnp.float32)

    @pl.when(c == pl.num_programs(1) - 1)
    def _():
        h = acc_ref[...]                                   # fp32 [tm, d_pad]
        h_out_ref[...] = h.astype(h_out_ref.dtype)         # next hop's input
        out_ref[...] = (sum_ref[...] + combine_scale * h).astype(out_ref.dtype)


# ------------------------------ wrapper ------------------------------------ #
@functools.partial(
    jax.jit,
    static_argnames=("alpha", "k", "compute_dtype", "tm", "tk",
                     "feat_resident_budget_bytes"))
def s2gc_aggregate(adj, feat, *, alpha=0.05, k=1,
                   compute_dtype=jnp.bfloat16, tm=512, tk=512,
                   feat_resident_budget_bytes=8 * 2**20):
    """out = (1-alpha)/k * sum_{i=1..k} S^i feat + alpha * feat."""
    assert k >= 1
    n, d = feat.shape
    assert adj.shape == (n, n)

    # Graph preprocessing (one-time, cheap): symmetric in-degree normalization.
    deg = jnp.maximum(jnp.sum(adj.astype(jnp.float32), axis=1), 1.0)
    inv_sqrt = jax.lax.rsqrt(deg)
    s = inv_sqrt[:, None] * adj.astype(jnp.float32) * inv_sqrt[None, :]

    # Tile / pad geometry: 128-aligned tiles, lane-dense (128-padded) features.
    n_al = _round_up(n, 128)
    tm = max(128, min(int(tm), n_al)) // 128 * 128
    tk = max(128, min(int(tk), n_al)) // 128 * 128
    n_pad = _round_up(n, math.lcm(tm, tk))
    d_pad = _round_up(max(d, 128), 128)

    s_p = jnp.zeros((n_pad, n_pad), compute_dtype).at[:n, :n].set(
        s.astype(compute_dtype))
    h = jnp.zeros((n_pad, d_pad), compute_dtype).at[:n, :d].set(
        feat.astype(compute_dtype))
    # Running result starts at alpha * X; every hop adds (1-alpha)/k * S^i X.
    run = jnp.zeros((n_pad, d_pad), jnp.float32).at[:n, :d].set(
        float(alpha) * feat.astype(jnp.float32))

    grid = (n_pad // tm, n_pad // tk)
    combine_scale = (1.0 - float(alpha)) / float(k)
    cb = jnp.dtype(compute_dtype).itemsize

    # Hop-feature layout: resident in VMEM when small, streamed per
    # contraction tile otherwise (scales to large graphs).
    feat_resident = (2 * n_pad * d_pad * cb) <= int(feat_resident_budget_bytes)
    if feat_resident:
        feat_spec = pl.BlockSpec((n_pad, d_pad), lambda r, c: (0, 0))
        feat_vmem = 2 * n_pad * d_pad * cb
    else:
        feat_spec = pl.BlockSpec((tk, d_pad), lambda r, c: (c, 0))
        feat_vmem = 2 * tk * d_pad * cb

    # Explicit VMEM budget (double buffers for every streamed operand + fp32
    # accumulator), with 1.5x headroom; stays well under v7x's 64 MiB.
    est = (2 * tm * tk * cb                 # streamed S tile
           + feat_vmem                      # hop-input features
           + 2 * tm * d_pad * 4             # running-sum input (fp32)
           + 2 * tm * d_pad * cb            # h_out
           + 2 * tm * d_pad * 4             # running-sum output (fp32)
           + tm * d_pad * 4)                # fp32 accumulator scratch
    vmem_limit = int(min(48 * 2**20, max(16 * 2**20, est + est // 2)))

    hop_call = pl.pallas_call(
        functools.partial(_s2gc_hop_kernel,
                          combine_scale=combine_scale,
                          feat_resident=feat_resident),
        grid_spec=pltpu.PrefetchScalarGridSpec(
            num_scalar_prefetch=0,
            grid=grid,
            in_specs=[
                # streamed, double-buffered normalized-adjacency tile
                pl.BlockSpec((tm, tk), lambda r, c: (r, c)),
                # hop-input features (resident or streamed; see above)
                feat_spec,
                # running combined result (row tile, aliased with output 1)
                pl.BlockSpec((tm, d_pad), lambda r, c: (r, 0)),
            ],
            out_specs=[
                pl.BlockSpec((tm, d_pad), lambda r, c: (r, 0)),  # h_out
                pl.BlockSpec((tm, d_pad), lambda r, c: (r, 0)),  # new run
            ],
            scratch_shapes=[pltpu.VMEM((tm, d_pad), jnp.float32)],
        ),
        out_shape=(
            jax.ShapeDtypeStruct((n_pad, d_pad), compute_dtype),  # h_out
            jax.ShapeDtypeStruct((n_pad, d_pad), jnp.float32),    # run
        ),
        # Update the fp32 running sum in place (input 2 -> output 1).
        input_output_aliases={2: 1},
        compiler_params=pltpu.CompilerParams(
            dimension_semantics=("parallel", "arbitrary"),
            vmem_limit_bytes=vmem_limit),
    )

    for _ in range(k):
        h, run = hop_call(s_p, h, run)

    return run[:n, :d].astype(feat.dtype)


# ------------------------------- module ------------------------------------ #
class CustomS2GCAgg:
    """JAX/Pallas port of CustomS2GC_Agg (dense 0/1 adjacency replaces the DGL graph)."""

    def __init__(self, alpha=0.05, k=1, cached=False, norm=None,
                 allow_zero_in_degree=False,
                 compute_dtype=jnp.bfloat16, tm=512, tk=512,
                 feat_resident_budget_bytes=8 * 2**20):
        self._cached = cached
        self._cached_h = None
        self._alpha = float(alpha)
        self._k = int(k)
        self.norm = norm
        self._allow_zero_in_degree = allow_zero_in_degree
        self._compute_dtype = compute_dtype
        self._tm = int(tm)
        self._tk = int(tk)
        self._feat_budget = int(feat_resident_budget_bytes)

    def set_allow_zero_in_degree(self, set_value):
        self._allow_zero_in_degree = set_value

    def forward(self, adj, feat):
        """adj: dense [N, N] 0/1 adjacency with adj[dst, src] = 1 for edge src->dst."""
        if not self._allow_zero_in_degree:
            # Eager host-side check mirroring the DGLError in the reference.
            if bool(jnp.any(jnp.sum(adj, axis=1) == 0)):
                raise ValueError(
                    "There are 0-in-degree nodes in the graph; add self loops "
                    "or construct with allow_zero_in_degree=True.")
        if self._cached_h is not None:
            return self._cached_h
        out = s2gc_aggregate(adj, feat, alpha=self._alpha, k=self._k,
                             compute_dtype=self._compute_dtype,
                             tm=self._tm, tk=self._tk,
                             feat_resident_budget_bytes=self._feat_budget)
        if self.norm is not None:
            out = self.norm(out)
        if self._cached:
            self._cached_h = out
        return out


# ------------------------------ reference ----------------------------------- #
def reference_s2gc(adj, feat, alpha, k):
    """Pure fp32 jnp mirror of the PyTorch forward (no caching, norm=None)."""
    deg = jnp.maximum(jnp.sum(adj, axis=1), 1.0)
    norm = (deg ** -0.5)[:, None]
    h = feat
    acc = jnp.zeros_like(feat)
    for _ in range(k):
        h = h * norm                 # feat = feat * norm
        h = adj @ h                  # update_all(copy_u('h','m'), sum('m','h'))
        h = h * norm                 # feat = feat * norm
        acc = acc + h
    return (1.0 - alpha) / k * acc + alpha * feat


if __name__ == "__main__":
    key = jax.random.PRNGKey(0)
    k_adj, k_feat = jax.random.split(key)

    # Small but tiling-exercising shapes: N=256 nodes, D=32 features, k=4 hops.
    N, D, K_HOPS, ALPHA = 256, 32, 4, 0.05

    # Deterministic random undirected graph with self loops (no 0-in-degree).
    a = (jax.random.uniform(k_adj, (N, N)) < 0.05).astype(jnp.float32)
    a = jnp.maximum(a, a.T)
    a = jnp.maximum(a, jnp.eye(N, dtype=jnp.float32))
    feat = jax.random.normal(k_feat, (N, D), jnp.float32)

    ref = reference_s2gc(a, feat, ALPHA, K_HOPS)

    # Path 1: VMEM-resident hop features (auto-selected for small graphs).
    # tm=tk=128 so the demo runs a real (2, 2) grid; production default is 512.
    model = CustomS2GCAgg(alpha=ALPHA, k=K_HOPS, cached=False, tm=128, tk=128)
    out = jax.block_until_ready(model.forward(a, feat))
    assert out.shape == (N, D)
    # bf16-streamed adjacency/features with fp32 accumulation: ~1e-3 level error.
    assert jnp.allclose(out, ref, atol=2e-2, rtol=2e-2), \
        float(jnp.max(jnp.abs(out - ref)))

    # Path 2: streamed hop-feature tiles (large-graph path), forced here by a
    # zero residency budget to make sure both layouts compile and agree.
    out2 = jax.block_until_ready(
        s2gc_aggregate(a, feat, alpha=ALPHA, k=K_HOPS, tm=128, tk=128,
                       feat_resident_budget_bytes=0))
    assert jnp.allclose(out2, ref, atol=2e-2, rtol=2e-2), \
        float(jnp.max(jnp.abs(out2 - ref)))

    print("KERNEL_OK")
</pallas_src>

<mosaic_0001>
module attributes {stable_mosaic.version = 11 : i64} {
  func.func @_s2gc_hop_kernel(%arg0: i32, %arg1: i32, %arg2: memref<128x128xbf16, #tpu.memory_space<vmem>>, %arg3: memref<256x128xbf16, #tpu.memory_space<vmem>>, %arg4: memref<128x128xf32, #tpu.memory_space<vmem>>, %arg5: memref<128x128xbf16, #tpu.memory_space<vmem>>, %arg6: memref<128x128xf32, #tpu.memory_space<vmem>>, %arg7: memref<128x128xf32, #tpu.memory_space<vmem>>) attributes {dimension_semantics = [#tpu.dimension_semantics<parallel>, #tpu.dimension_semantics<arbitrary>], iteration_bounds = array<i64: 2, 2>, scalar_prefetch = 0 : i64, scratch_operands = 1 : i64, tpu.core_type = #tpu.core_type<tc>, window_params = [{transform_indices = @transform_0, window_bounds = array<i64: 128, 128>}, {pipeline_mode = #tpu.pipeline_mode<synchronous>, transform_indices = @transform_1, window_bounds = array<i64: 256, 128>}, {transform_indices = @transform_2, window_bounds = array<i64: 128, 128>}, {transform_indices = @transform_3, window_bounds = array<i64: 128, 128>}, {transform_indices = @transform_4, window_bounds = array<i64: 128, 128>}]} {
    %c0_i32 = arith.constant 0 : i32
    %0 = arith.cmpi eq, %arg1, %c0_i32 : i32
    %1 = arith.extui %0 : i1 to i32
    %c0_i32_0 = arith.constant 0 : i32
    %2 = arith.cmpi ne, %1, %c0_i32_0 : i32
    scf.if %2 {
      %cst_8 = arith.constant 0.000000e+00 : f32
      %15 = vector.broadcast %cst_8 : f32 to vector<128x128xf32>
      %c0_9 = arith.constant 0 : index
      %c0_10 = arith.constant 0 : index
      %16 = vector.load %arg7[%c0_9, %c0_10] : memref<128x128xf32, #tpu.memory_space<vmem>>, vector<128x128xf32>
      tpu.vector_store %arg7[%c0_9, %c0_10], %15 {strides = array<i32>} : memref<128x128xf32, #tpu.memory_space<vmem>>, vector<128x128xf32>,
    } else {
    }
    %c128_i32 = arith.constant 128 : i32
    %3 = arith.muli %arg1, %c128_i32 : i32
    %4 = tpu.assume_multiple %3, 128 : i32
    %5 = arith.index_cast %4 : i32 to index
    %c0 = arith.constant 0 : index
    %6 = vector.load %arg3[%5, %c0] : memref<256x128xbf16, #tpu.memory_space<vmem>>, vector<128x128xbf16>
    %c0_1 = arith.constant 0 : index
    %c0_2 = arith.constant 0 : index
    %7 = vector.load %arg7[%c0_1, %c0_2] : memref<128x128xf32, #tpu.memory_space<vmem>>, vector<128x128xf32>
    %c0_3 = arith.constant 0 : index
    %c0_4 = arith.constant 0 : index
    %8 = vector.load %arg2[%c0_3, %c0_4] : memref<128x128xbf16, #tpu.memory_space<vmem>>, vector<128x128xbf16>
    %cst = arith.constant dense<0.000000e+00> : vector<128x128xf32>
    %9 = tpu.matmul %8, %6, %cst {dimension_numbers = #tpu.dot_dimension_numbers<[1], [0], [0], [1], [0, 0, 1, 1], [], []>} : vector<128x128xbf16>, vector<128x128xbf16>, vector<128x128xf32> -> vector<128x128xf32>
    %10 = arith.addf %7, %9 : vector<128x128xf32>
    %c0_5 = arith.constant 0 : index
    %c0_6 = arith.constant 0 : index
    %11 = vector.load %arg7[%c0_5, %c0_6] : memref<128x128xf32, #tpu.memory_space<vmem>>, vector<128x128xf32>
    tpu.vector_store %arg7[%c0_5, %c0_6], %10 {strides = array<i32>} : memref<128x128xf32, #tpu.memory_space<vmem>>, vector<128x128xf32>,
    %c1_i32 = arith.constant 1 : i32
    %12 = arith.cmpi eq, %arg1, %c1_i32 : i32
    %13 = arith.extui %12 : i1 to i32
    %c0_i32_7 = arith.constant 0 : i32
    %14 = arith.cmpi ne, %13, %c0_i32_7 : i32
    scf.if %14 {
      %c0_8 = arith.constant 0 : index
      %c0_9 = arith.constant 0 : index
      %15 = vector.load %arg7[%c0_8, %c0_9] : memref<128x128xf32, #tpu.memory_space<vmem>>, vector<128x128xf32>
      %16 = arith.truncf %15 : vector<128x128xf32> to vector<128x128xbf16>
      %c0_10 = arith.constant 0 : index
      %c0_11 = arith.constant 0 : index
      %17 = vector.load %arg5[%c0_10, %c0_11] : memref<128x128xbf16, #tpu.memory_space<vmem>>, vector<128x128xbf16>
      tpu.vector_store %arg5[%c0_10, %c0_11], %16 {strides = array<i32>} : memref<128x128xbf16, #tpu.memory_space<vmem>>, vector<128x128xbf16>,
      %c0_12 = arith.constant 0 : index
      %c0_13 = arith.constant 0 : index
      %18 = vector.load %arg4[%c0_12, %c0_13] : memref<128x128xf32, #tpu.memory_space<vmem>>, vector<128x128xf32>
      %cst_14 = arith.constant 2.375000e-01 : f32
      %19 = vector.broadcast %cst_14 : f32 to vector<128x128xf32>
      %20 = arith.mulf %19, %15 : vector<128x128xf32>
      %21 = arith.addf %18, %20 : vector<128x128xf32>
      %c0_15 = arith.constant 0 : index
      %c0_16 = arith.constant 0 : index
      %22 = vector.load %arg6[%c0_15, %c0_16] : memref<128x128xf32, #tpu.memory_space<vmem>>, vector<128x128xf32>
      tpu.vector_store %arg6[%c0_15, %c0_16], %21 {strides = array<i32>} : memref<128x128xf32, #tpu.memory_space<vmem>>, vector<128x128xf32>,
    } else {
    }
    return
  }
  func.func @transform_0(%arg0: i32, %arg1: i32) -> (i32, i32) {
    %c0_i32 = arith.constant 0 : i32
    return %arg0, %arg1 : i32, i32
  }
  func.func @transform_1(%arg0: i32, %arg1: i32) -> (i32, i32) {
    %c0_i32 = arith.constant 0 : i32
    %c0_i32_0 = arith.constant 0 : i32
    %c0_i32_1 = arith.constant 0 : i32
    return %c0_i32, %c0_i32_0 : i32, i32
  }
  func.func @transform_2(%arg0: i32, %arg1: i32) -> (i32, i32) {
    %c0_i32 = arith.constant 0 : i32
    %c0_i32_0 = arith.constant 0 : i32
    return %arg0, %c0_i32 : i32, i32
  }
  func.func @transform_3(%arg0: i32, %arg1: i32) -> (i32, i32) {
    %c0_i32 = arith.constant 0 : i32
    %c0_i32_0 = arith.constant 0 : i32
    return %arg0, %c0_i32 : i32, i32
  }
  func.func @transform_4(%arg0: i32, %arg1: i32) -> (i32, i32) {
    %c0_i32 = arith.constant 0 : i32
    %c0_i32_0 = arith.constant 0 : i32
    return %arg0, %c0_i32 : i32, i32
  }
}

module attributes {stable_mosaic.version = 11 : i64} {
  func.func @_s2gc_hop_kernel(%arg0: i32, %arg1: i32, %arg2: memref<128x128xbf16, #tpu.memory_space<vmem>>, %arg3: memref<256x128xbf16, #tpu.memory_space<vmem>>, %arg4: memref<128x128xf32, #tpu.memory_space<vmem>>, %arg5: memref<128x128xbf16, #tpu.memory_space<vmem>>, %arg6: memref<128x128xf32, #tpu.memory_space<vmem>>, %arg7: memref<128x128xf32, #tpu.memory_space<vmem>>) attributes {dimension_semantics = [#tpu.dimension_semantics<parallel>, #tpu.dimension_semantics<arbitrary>], iteration_bounds = array<i64: 2, 2>, scalar_prefetch = 0 : i64, scratch_operands = 1 : i64, tpu.core_type = #tpu.core_type<tc>, window_params = [{transform_indices = @transform_0, window_bounds = array<i64: 128, 128>}, {pipeline_mode = #tpu.pipeline_mode<synchronous>, transform_indices = @transform_1, window_bounds = array<i64: 256, 128>}, {transform_indices = @transform_2, window_bounds = array<i64: 128, 128>}, {transform_indices = @transform_3, window_bounds = array<i64: 128, 128>}, {transform_indices = @transform_4, window_bounds = array<i64: 128, 128>}]} {
    %c0_i32 = arith.constant 0 : i32
    %0 = arith.cmpi eq, %arg1, %c0_i32 : i32
    %1 = arith.extui %0 : i1 to i32
    %c0_i32_0 = arith.constant 0 : i32
    %2 = arith.cmpi ne, %1, %c0_i32_0 : i32
    scf.if %2 {
      %cst_8 = arith.constant 0.000000e+00 : f32
      %15 = vector.broadcast %cst_8 : f32 to vector<128x128xf32>
      %c0_9 = arith.constant 0 : index
      %c0_10 = arith.constant 0 : index
      %16 = vector.load %arg7[%c0_9, %c0_10] : memref<128x128xf32, #tpu.memory_space<vmem>>, vector<128x128xf32>
      tpu.vector_store %arg7[%c0_9, %c0_10], %15 {strides = array<i32>} : memref<128x128xf32, #tpu.memory_space<vmem>>, vector<128x128xf32>,
    } else {
    }
    %c128_i32 = arith.constant 128 : i32
    %3 = arith.muli %arg1, %c128_i32 : i32
    %4 = tpu.assume_multiple %3, 128 : i32
    %5 = arith.index_cast %4 : i32 to index
    %c0 = arith.constant 0 : index
    %6 = vector.load %arg3[%5, %c0] : memref<256x128xbf16, #tpu.memory_space<vmem>>, vector<128x128xbf16>
    %c0_1 = arith.constant 0 : index
    %c0_2 = arith.constant 0 : index
    %7 = vector.load %arg7[%c0_1, %c0_2] : memref<128x128xf32, #tpu.memory_space<vmem>>, vector<128x128xf32>
    %c0_3 = arith.constant 0 : index
    %c0_4 = arith.constant 0 : index
    %8 = vector.load %arg2[%c0_3, %c0_4] : memref<128x128xbf16, #tpu.memory_space<vmem>>, vector<128x128xbf16>
    %cst = arith.constant dense<0.000000e+00> : vector<128x128xf32>
    %9 = tpu.matmul %8, %6, %cst {dimension_numbers = #tpu.dot_dimension_numbers<[1], [0], [0], [1], [0, 0, 1, 1], [], []>} : vector<128x128xbf16>, vector<128x128xbf16>, vector<128x128xf32> -> vector<128x128xf32>
    %10 = arith.addf %7, %9 : vector<128x128xf32>
    %c0_5 = arith.constant 0 : index
    %c0_6 = arith.constant 0 : index
    %11 = vector.load %arg7[%c0_5, %c0_6] : memref<128x128xf32, #tpu.memory_space<vmem>>, vector<128x128xf32>
    tpu.vector_store %arg7[%c0_5, %c0_6], %10 {strides = array<i32>} : memref<128x128xf32, #tpu.memory_space<vmem>>, vector<128x128xf32>,
    %c1_i32 = arith.constant 1 : i32
    %12 = arith.cmpi eq, %arg1, %c1_i32 : i32
    %13 = arith.extui %12 : i1 to i32
    %c0_i32_7 = arith.constant 0 : i32
    %14 = arith.cmpi ne, %13, %c0_i32_7 : i32
    scf.if %14 {
      %c0_8 = arith.constant 0 : index
      %c0_9 = arith.constant 0 : index
      %15 = vector.load %arg7[%c0_8, %c0_9] : memref<128x128xf32, #tpu.memory_space<vmem>>, vector<128x128xf32>
      %16 = arith.truncf %15 : vector<128x128xf32> to vector<128x128xbf16>
      %c0_10 = arith.constant 0 : index
      %c0_11 = arith.constant 0 : index
      %17 = vector.load %arg5[%c0_10, %c0_11] : memref<128x128xbf16, #tpu.memory_space<vmem>>, vector<128x128xbf16>
      tpu.vector_store %arg5[%c0_10, %c0_11], %16 {strides = array<i32>} : memref<128x128xbf16, #tpu.memory_space<vmem>>, vector<128x128xbf16>,
      %c0_12 = arith.constant 0 : index
      %c0_13 = arith.constant 0 : index
      %18 = vector.load %arg4[%c0_12, %c0_13] : memref<128x128xf32, #tpu.memory_space<vmem>>, vector<128x128xf32>
      %cst_14 = arith.constant 2.375000e-01 : f32
      %19 = vector.broadcast %cst_14 : f32 to vector<128x128xf32>
      %20 = arith.mulf %19, %15 : vector<128x128xf32>
      %21 = arith.addf %18, %20 : vector<128x128xf32>
      %c0_15 = arith.constant 0 : index
      %c0_16 = arith.constant 0 : index
      %22 = vector.load %arg6[%c0_15, %c0_16] : memref<128x128xf32, #tpu.memory_space<vmem>>, vector<128x128xf32>
      tpu.vector_store %arg6[%c0_15, %c0_16], %21 {strides = array<i32>} : memref<128x128xf32, #tpu.memory_space<vmem>>, vector<128x128xf32>,
    } else {
    }
    return
  }
  func.func @transform_0(%arg0: i32, %arg1: i32) -> (i32, i32) {
    %c0_i32 = arith.constant 0 : i32
    return %arg0, %arg1 : i32, i32
  }
  func.func @transform_1(%arg0: i32, %arg1: i32) -> (i32, i32) {
    %c0_i32 = arith.constant 0 : i32
    %c0_i32_0 = arith.constant 0 : i32
    %c0_i32_1 = arith.constant 0 : i32
    return %c0_i32, %c0_i32_0 : i32, i32
  }
  func.func @transform_2(%arg0: i32, %arg1: i32) -> (i32, i32) {
    %c0_i32 = arith.constant 0 : i32
    %c0_i32_0 = arith.constant 0 : i32
    return %arg0, %c0_i32 : i32, i32
  }
  func.func @transform_3(%arg0: i32, %arg1: i32) -> (i32, i32) {
    %c0_i32 = arith.constant 0 : i32
    %c0_i32_0 = arith.constant 0 : i32
    return %arg0, %c0_i32 : i32, i32
  }
  func.func @transform_4(%arg0: i32, %arg1: i32) -> (i32, i32) {
    %c0_i32 = arith.constant 0 : i32
    %c0_i32_0 = arith.constant 0 : i32
    return %arg0, %c0_i32 : i32, i32
  }
}

</mosaic_0001>

<bundles_post_ra>
// kernel: s2gc_aggregate.7
= control target key start
LH: loop header
LB: loop body
LE: loop exit
PB: predicated region body
PF: predicated region fallthrough
CT: control target
= control target key end

     0   :  { %s1661_s0 = inlined_call_operand.vmem [shape: bf16[256,256], index: 0, kind: input, shape index: {}]   ;;  %s1662_s1 = inlined_call_operand.vmem [shape: bf16[256,128], index: 1, kind: input, shape index: {}]   ;;  %s1663_s2 = inlined_call_operand.vmem [shape: f32[256,128], index: 2, kind: input, shape index: {}, may-alias: {2,4}]   ;;  %s1664_s3 = inlined_call_operand.hbm [shape: bf16[256,128], index: 3, kind: output, shape index: {0}]   ;;  %s1665_s4 = inlined_call_operand.vmem [shape: f32[256,128], index: 4, kind: output, shape index: {1}, may-alias: {2,4}]  }
   0x1   :  { %1668 = sst [smem:[#allocation9_spill]] %s1661_s0 }
   0x2   :  { %10 = vsyncpa [#allocation5], 0 }
   0x3   :  { %12 = vsyncpa [#allocation5 + $0x1], 0  ;;  %s1390_s15 = smov 0   ;;  %s1392_s16 = smov 0  }
   0x4   :  { %s1394_s17 = smov 0   ;;  %s1396_s18 = smov 0  }
   0x5   :  { %s1398_s19 = smov 0   ;;  %s1400_s20 = smov 0  }
   0x6   :  { %s1402_s21 = smov 0   ;;  %s1404_s22 = smov 0  }
   0x7   :  { %s1406_s23 = smov 0   ;;  %s1408_s24 = smov 0  }
   0x8 LB: > { %s958_s25 = sadd.s32 4294967295, %s1359_s24   ;;  %s959_s26 = sadd.s32 4294967294, %s1359_s24   ;;  %s1359_s24 = sphi %s1408_s24, %s18_s24   ;;  %s1355_s23 = sphi %s1406_s23, %s1685_s23   ;;  %s1351_s22 = sphi %s1404_s22, %s1684_s22   ;;  %s1347_s21 = sphi %s1402_s21, %s1683_s21   ;;  %s1343_s20 = sphi %s1400_s20, %s1682_s20   ;;  %s1339_s19 = sphi %s1398_s19, %s1681_s19   ;;  %s1335_s18 = sphi %s1396_s18, %s1680_s18   ;;  %s1331_s17 = sphi %s1394_s17, %s1679_s17   ;;  %s1327_s16 = sphi %s1392_s16, %s1678_s16   ;;  %s1323_s15 = sphi %s1390_s15, %s1677_s15  }
   0x9   : > { %s27_s27 = sadd.s32 1, %s1351_s22  ;;  %s30_s28 = sadd.s32 1, %s1355_s23 }
   0xa   : > { %p28_p0 = scmp.ge.s32.totalorder %s27_s27, 2  ;;  %s39_s29 = sadd.s32 1, %s1339_s19 }
   0xb   : > { %p46_p1 = scmp.ne.s32.totalorder %s1339_s19, %s1335_s18  ;;  %p47_p2 = scmp.eq.s32.totalorder %s1359_s24, 0 }
   0xc   : > { %s1687_s27 = smov (%p28_p0, %s27_s27), 0  ;;  %s1689_s28 = smov (!%p28_p0, %s30_s28), %s1355_s23 }
   0xd   : > { %1669 = sst [smem:[#allocation7_spill]] %s1687_s27  ;;  %s35_s30 = ssub.s32 %s1351_s22, %s1687_s27 }
   0xe   : > { %p1453_p3 = por %p47_p2, %p46_p1  ;;  %p32_p4 = scmp.ge.s32.totalorder %s1689_s28, 2 }
   0xf   : > { %s112_s6 = sadd.s32 1, %s1331_s17  ;;  %p122_p5 = scmp.ne.s32.totalorder %s1331_s17, %s1327_s16 }
  0x10   : > { %p123_p6 = scmp.eq.s32.totalorder %s958_s25, 3  ;;  %s1691_s28 = smov (%p32_p4, %s1689_s28), 0 }
  0x11   : > { %1671 = sst [smem:[#allocation8_spill]] %s1691_s28  ;;  %p128_p8 = scmp.ne.s32.totalorder %s1327_s16, %s1323_s15 }
  0x12   : > { %p1462_p7 = por %p123_p6, %p122_p5  ;;  %s34_s8 = ssub.s32 %s1355_s23, %s1691_s28 }
  0x13   : > { %p129_p9 = scmp.eq.s32.totalorder %s959_s26, 3  ;;  %s36_s9 = sor.u32 %s35_s30, %s34_s8 }
  0x14   : > { %p110_p10 = scmp.eq.s32.totalorder %s34_s8, 0  ;;  %p37_p11 = scmp.eq.s32.totalorder %s36_s9, 0 }
  0x15   : > { %p1470_p12 = por %p129_p9, %p128_p8  ;;  %p961_p13 = scmp.ge.s32.totalorder %s1359_s24, 4 }
  0x16   : > { %s1475_s11 = scalar_select %p110_p10, %s1331_s17, %s112_s6  }
  0x17   : > { %s1478_s12 = scalar_select %p37_p11, %s1339_s19, %s39_s29  }
  0x18   : > { %174 = sbr.rel (%p961_p13) target bundleno = 51 (0x33), region = 20 }
  0x1f   : > { %177 = sbr.rel (!%p1453_p3) target bundleno = 51 (0x33), region = 24  ;;  %s179_s13 = sand.u32 (%p1453_p3), 1, %s1339_s19  }
  0x20   : > { %s1014_s14 = sshll.u32 (%p1453_p3), %s1355_s23, 5  ;;  %s962_s25 = sshll.u32 (%p1453_p3), %s179_s13, 6 }
  0x21   : > { %s184_s26 = sadd.s32 (%p1453_p3), %s1351_s22, %s1014_s14  ;;  %s1674_s0 = sld [smem:[#allocation9_spill]] (%p1453_p3) }
  0x22   : > { %s965_s30 = sshll.u32 (%p1453_p3), %s184_s26, 2  ;;  %s181_s29 = scalar_lea.vmem (%p1453_p3), [#allocation3], %s962_s25 }
  0x27   : > { %s1489_s6 = scalar_lea.vmem %s1674_s0, %s965_s30 }
  0x28   : > { %v202_v0 = vld [vmem:[%s1489_s6] sm:$0xf]  ;;  %v204_v1 = vld [vmem:[%s1489_s6 + $0x8] sm:$0xf]  ;;  %v206_v2 = vld [vmem:[%s1489_s6 + $0x10] sm:$0xf] }
  0x29   : > { %203 = vst [vmem:[%s181_s29] sm:$0xf] %v202_v0  ;;  %205 = vst [vmem:[%s181_s29 + $0x4] sm:$0xf] %v204_v1  ;;  %v208_v3 = vld [vmem:[%s1489_s6 + $0x18] sm:$0xf] }
  0x2a   : > { %207 = vst [vmem:[%s181_s29 + $0x8] sm:$0xf] %v206_v2  ;;  %v210_v4 = vld [vmem:[%s1489_s6 + $0x20] sm:$0xf]  ;;  %v212_v5 = vld [vmem:[%s1489_s6 + $0x28] sm:$0xf] }
  0x2b   : > { %209 = vst [vmem:[%s181_s29 + $0xc] sm:$0xf] %v208_v3  ;;  %211 = vst [vmem:[%s181_s29 + $0x10] sm:$0xf] %v210_v4  ;;  %v214_v6 = vld [vmem:[%s1489_s6 + $0x30] sm:$0xf] }
  0x2c   : > { %213 = vst [vmem:[%s181_s29 + $0x14] sm:$0xf] %v212_v5  ;;  %v216_v7 = vld [vmem:[%s1489_s6 + $0x38] sm:$0xf]  ;;  %v218_v8 = vld [vmem:[%s1489_s6 + $0x40] sm:$0xf] }
  0x2d   : > { %215 = vst [vmem:[%s181_s29 + $0x18] sm:$0xf] %v214_v6  ;;  %217 = vst [vmem:[%s181_s29 + $0x1c] sm:$0xf] %v216_v7  ;;  %v220_v9 = vld [vmem:[%s1489_s6 + $0x48] sm:$0xf] }
  0x2e   : > { %219 = vst [vmem:[%s181_s29 + $0x20] sm:$0xf] %v218_v8  ;;  %v222_v10 = vld [vmem:[%s1489_s6 + $0x50] sm:$0xf]  ;;  %v224_v11 = vld [vmem:[%s1489_s6 + $0x58] sm:$0xf] }
  0x2f   : > { %221 = vst [vmem:[%s181_s29 + $0x24] sm:$0xf] %v220_v9  ;;  %223 = vst [vmem:[%s181_s29 + $0x28] sm:$0xf] %v222_v10  ;;  %v226_v12 = vld [vmem:[%s1489_s6 + $0x60] sm:$0xf] }
  0x30   : > { %225 = vst [vmem:[%s181_s29 + $0x2c] sm:$0xf] %v224_v11  ;;  %v228_v13 = vld [vmem:[%s1489_s6 + $0x68] sm:$0xf]  ;;  %v230_v14 = vld [vmem:[%s1489_s6 + $0x70] sm:$0xf] }
  0x31   : > { %227 = vst [vmem:[%s181_s29 + $0x30] sm:$0xf] %v226_v12  ;;  %229 = vst [vmem:[%s181_s29 + $0x34] sm:$0xf] %v228_v13  ;;  %v232_v15 = vld [vmem:[%s1489_s6 + $0x78] sm:$0xf] }
  0x32   : > { %231 = vst [vmem:[%s181_s29 + $0x38] sm:$0xf] %v230_v14  ;;  %233 = vst [vmem:[%s181_s29 + $0x3c] sm:$0xf] %v232_v15 }
  0x33 PF: > { %p966_p0 = scmp.ge.s32.totalorder %s1359_s24, 1  ;;  %p296_p1 = scmp.lt.s32.totalorder %s1359_s24, 5 }
  0x35   : > { %p297_p2 = pnand %p966_p0, %p296_p1 }
  0x36   : > { %s303_s5 = sand.u32 (!%p297_p2), 1, %s1335_s18   ;;  %s328_s13 = sand.u32 (!%p297_p2), 1, %s1327_s16  }
  0x37   : > { %300 = sbr.rel (%p297_p2) target bundleno = 375 (0x177), region = 69  ;;  %s967_s14 = sshll.u32 (!%p297_p2), %s303_s5, 6 }
  0x38   : > { %s968_s25 = sshll.u32 (!%p297_p2), %s328_s13, 6  ;;  %s969_s26 = sshll.u32 (!%p297_p2), %s1347_s21, 4 }
  0x39   : > { %p340_p3 = scmp.lt.s32.totalorder (!%p297_p2), %s969_s26, 31  ;;  %s1524_s27 = scalar_lea.vmem (!%p297_p2), [#allocation3], %s967_s14 }
  0x3a   : > { %s1526_s18 = scalar_lea.vmem (!%p297_p2), [#allocation4], %s968_s25  ;;  %p973_p4 = scmp.ne.s32.totalorder (!%p297_p2), %s1343_s20, 0 }
  0x3e   : > { %s1693_s26 = smov (!%p340_p3, %s969_s26), 31  ;;  %356 = sbr.rel (%p973_p4) target bundleno = 72 (0x48), region = 77 }
  0x3f   : > { %s970_s30 = sshll.u32 %s1693_s26, 3  ;;  %v1361_v16 = vmov (!%p973_p4), 0.0  }
  0x40   : > { %s1517_s6 = scalar_lea.vmem %s1663_s2, %s970_s30  ;;  %s1522_s28 = scalar_lea.vmem %s1665_s4, %s970_s30  ;;  %357 = vst [vmem:[#allocation2] sm:$0xff] (!%p973_p4), %v1361_v16  ;;  %358 = vst [vmem:[#allocation2 + $0x8] sm:$0xff] (!%p973_p4), %v1361_v16 }
  0x41   : > { %359 = vst [vmem:[#allocation2 + $0x10] sm:$0xff] (!%p973_p4), %v1361_v16  ;;  %360 = vst [vmem:[#allocation2 + $0x18] sm:$0xff] (!%p973_p4), %v1361_v16 }
  0x42   : > { %361 = vst [vmem:[#allocation2 + $0x20] sm:$0xff] (!%p973_p4), %v1361_v16  ;;  %362 = vst [vmem:[#allocation2 + $0x28] sm:$0xff] (!%p973_p4), %v1361_v16 }
  0x43   : > { %363 = vst [vmem:[#allocation2 + $0x30] sm:$0xff] (!%p973_p4), %v1361_v16  ;;  %364 = vst [vmem:[#allocation2 + $0x38] sm:$0xff] (!%p973_p4), %v1361_v16 }
  0x44   : > { %365 = vst [vmem:[#allocation2 + $0x40] sm:$0xff] (!%p973_p4), %v1361_v16  ;;  %366 = vst [vmem:[#allocation2 + $0x48] sm:$0xff] (!%p973_p4), %v1361_v16 }
  0x45   : > { %367 = vst [vmem:[#allocation2 + $0x50] sm:$0xff] %v1361_v16  ;;  %368 = vst [vmem:[#allocation2 + $0x58] sm:$0xff] %v1361_v16 }
  0x46   : > { %369 = vst [vmem:[#allocation2 + $0x60] sm:$0xff] %v1361_v16  ;;  %370 = vst [vmem:[#allocation2 + $0x68] sm:$0xff] %v1361_v16 }
  0x47   : > { %371 = vst [vmem:[#allocation2 + $0x70] sm:$0xff] %v1361_v16  ;;  %372 = vst [vmem:[#allocation2 + $0x78] sm:$0xff] %v1361_v16 }
  0x48 PF: > { %s974_s0 = sshll.u32 %s1343_s20, 7  ;;  %v1241_v17 = vld [vmem:[%s1524_s27] sm:$0xff]   ;;  %v1243_v27 = vld [vmem:[%s1524_s27 + $0x8] sm:$0xff]   ;;  %v1245_v29 = vld [vmem:[%s1524_s27 + $0x10] sm:$0xff]   ;;  %p992_p5 = scmp.ne.s32.totalorder %s1343_s20, 1 }
  0x49   : > { %s374_s5 = sshra.s32 %s974_s0, 3  ;;  %v1242_v18 = vld [vmem:[%s1524_s27 + $0x20] sm:$0xff]   ;;  %1111 = vmatprep.mubr.bf16.mxu0 %v1241_v17  ;;  %v1244_v28 = vld [vmem:[%s1524_s27 + $0x28] sm:$0xff]   ;;  %v1246_v30 = vld [vmem:[%s1524_s27 + $0x30] sm:$0xff]  }
  0x4a   : > { %s975_s14 = sshll.u32 %s374_s5, 2  ;;  %1119 = vmatprep.mubr.bf16.mxu1 %v1242_v18  ;;  %v1247_v31 = vld [vmem:[%s1524_s27 + $0x18] sm:$0xff]   ;;  %v394_v35 = vld [vmem:[#allocation2] sm:$0xff]  ;;  %v395_v45 = vld [vmem:[#allocation2 + $0x8] sm:$0xff] }
  0x4b   : > { %s1535_s30 = scalar_lea.vmem %s1662_s1, %s975_s14  ;;  %v1248_v32 = vld [vmem:[%s1524_s27 + $0x38] sm:$0xff]   ;;  %v396_v33 = vld [vmem:[#allocation2 + $0x10] sm:$0xff] }
  0x4c   : > { %v1233_v19 = vld [vmem:[%s1535_s30] sm:$0xff]   ;;  %v1234_v20 = vld [vmem:[%s1535_s30 + $0x8] sm:$0xff]   ;;  %v1235_v21 = vld [vmem:[%s1535_s30 + $0x10] sm:$0xff]  }
  0x4d   : > { %1095 = vmatprep.subr.bf16.mxu0 %v1233_v19  ;;  %1127 = vmatprep.subr.bf16.mxu1 %v1233_v19  ;;  %v1236_v22 = vld [vmem:[%s1535_s30 + $0x18] sm:$0xff]   ;;  %v1237_v23 = vld [vmem:[%s1535_s30 + $0x20] sm:$0xff]   ;;  %v1238_v24 = vld [vmem:[%s1535_s30 + $0x28] sm:$0xff]  }
  0x4e   : > { %1096 = vmatpush3.bf16.msra.mxu0 %v1233_v19  ;;  %1135 = vmatpush3.bf16.msra.mxu1 %v1233_v19  ;;  %v1239_v25 = vld [vmem:[%s1535_s30 + $0x30] sm:$0xff]   ;;  %v1240_v26 = vld [vmem:[%s1535_s30 + $0x38] sm:$0xff]   ;;  %v402_v36 = vld [vmem:[#allocation2 + $0x40] sm:$0xff] }
  0x4f   : > { %1097 = vmatprep.subr.bf16.mxu0 %v1234_v20  ;;  %1128 = vmatprep.subr.bf16.mxu1 %v1234_v20  ;;  %v404_v34 = vld [vmem:[#allocation2 + $0x50] sm:$0xff]  ;;  %v397_v39 = vld [vmem:[#allocation2 + $0x18] sm:$0xff]  ;;  %v403_v46 = vld [vmem:[#allocation2 + $0x48] sm:$0xff] }
  0x50   : > { %v405_v40 = vld [vmem:[#allocation2 + $0x58] sm:$0xff]  ;;  %v400_v57 = vld [vmem:[#allocation2 + $0x30] sm:$0xff]  ;;  %v398_v59 = vld [vmem:[#allocation2 + $0x20] sm:$0xff] }
  0x51   : > { %v408_v58 = vld [vmem:[#allocation2 + $0x70] sm:$0xff]  ;;  %v406_v60 = vld [vmem:[#allocation2 + $0x60] sm:$0xff]  ;;  %v401_v63 = vld [vmem:[#allocation2 + $0x38] sm:$0xff] }
  0x52   : > { %1098 = vmatpush3.bf16.msra.mxu0 %v1234_v20  ;;  %1136 = vmatpush3.bf16.msra.mxu1 %v1234_v20  ;;  %v409_v0 = vld [vmem:[#allocation2 + $0x78] sm:$0xff]  ;;  %v399_v5 = vld [vmem:[#allocation2 + $0x28] sm:$0xff]  ;;  %v751_v19 = vld [vmem:[%s1517_s6] sm:$0xff] (!%p992_p5) }
  0x53   : > { %1099 = vmatprep.subr.bf16.mxu0 %v1235_v21  ;;  %1129 = vmatprep.subr.bf16.mxu1 %v1235_v21  ;;  %v407_v6 = vld [vmem:[#allocation2 + $0x68] sm:$0xff] }
  0x56   : > { %1100 = vmatpush3.bf16.msra.mxu0 %v1235_v21  ;;  %1137 = vmatpush3.bf16.msra.mxu1 %v1235_v21  ;;  %v752_v21 = vld [vmem:[%s1517_s6 + $0x8] sm:$0xff] (!%p992_p5) }
  0x57   : > { %1101 = vmatprep.subr.bf16.mxu0 %v1236_v22  ;;  %1130 = vmatprep.subr.bf16.mxu1 %v1236_v22 }
  0x5a   : > { %1102 = vmatpush3.bf16.msra.mxu0 %v1236_v22  ;;  %1138 = vmatpush3.bf16.msra.mxu1 %v1236_v22 }
  0x5b   : > { %1103 = vmatprep.subr.bf16.mxu0 %v1237_v23  ;;  %1131 = vmatprep.subr.bf16.mxu1 %v1237_v23 }
  0x5e   : > { %1104 = vmatpush3.bf16.msra.mxu0 %v1237_v23  ;;  %1139 = vmatpush3.bf16.msra.mxu1 %v1237_v23 }
  0x5f   : > { %1105 = vmatprep.subr.bf16.mxu0 %v1238_v24  ;;  %1132 = vmatprep.subr.bf16.mxu1 %v1238_v24 }
  0x62   : > { %1106 = vmatpush3.bf16.msra.mxu0 %v1238_v24  ;;  %1140 = vmatpush3.bf16.msra.mxu1 %v1238_v24 }
  0x63   : > { %1107 = vmatprep.subr.bf16.mxu0 %v1239_v25  ;;  %1133 = vmatprep.subr.bf16.mxu1 %v1239_v25 }
  0x66   : > { %1108 = vmatpush3.bf16.msra.mxu0 %v1239_v25  ;;  %1141 = vmatpush3.bf16.msra.mxu1 %v1239_v25 }
  0x67   : > { %1109 = vmatprep.subr.bf16.mxu0 %v1240_v26  ;;  %1134 = vmatprep.subr.bf16.mxu1 %v1240_v26 }
  0x6a   : > { %1110 = vmatpush3.bf16.msra.mxu0 %v1240_v26  ;;  %1142 = vmatpush3.bf16.msra.mxu1 %v1240_v26  ;;  %v753_v26 = vld [vmem:[%s1517_s6 + $0x10] sm:$0xff] (!%p992_p5) }
  0x6d   : > { %1112 = vmatmul.mubr.bf16.vlgmr.msra.gmra.mrb[0].mxu0 %v1243_v27  ;;  %1120 = vmatmul.mubr.bf16.vlgmr.msra.gmra.mrb[0].mxu1 %v1244_v28  ;;  %v754_v27 = vld [vmem:[%s1517_s6 + $0x18] sm:$0xff] (!%p992_p5) }
  0x6e   : > { %1115 = vmatprep.mubr.bf16.mxu0 %v1245_v29  ;;  %1123 = vmatprep.mubr.bf16.mxu1 %v1246_v30 }
  0x75   : > { %1116 = vmatmul.mubr.bf16.gmra.mrb[4].mxu0 %v1247_v31  ;;  %1124 = vmatmul.mubr.bf16.gmra.mrb[4].mxu1 %v1248_v32 }
 0x140   : > { %v1113_v37 = vpop.f32.mrb[0].mxu0  ;;  %v1121_v38 = vpop.f32.mrb[0].mxu1 }
 0x141   : > { %v621_v41 = vadd.f32 %v1113_v37, %v396_v33  ;;  %v629_v42 = vadd.f32 %v1121_v38, %v404_v34  ;;  %v556_v43 = vpop.f32.mrb[1].mxu0  ;;  %v588_v44 = vpop.f32.mrb[1].mxu1  ;;  %v755_v33 = vld [vmem:[%s1517_s6 + $0x20] sm:$0xff] (!%p992_p5) }
 0x142   : > { %v619_v47 = vadd.f32 %v556_v43, %v394_v35  ;;  %v627_v48 = vadd.f32 %v588_v44, %v402_v36  ;;  %v1114_v49 = vpop.f32.mrb[2].mxu0  ;;  %v1122_v50 = vpop.f32.mrb[2].mxu1  ;;  %v756_v35 = vld [vmem:[%s1517_s6 + $0x28] sm:$0xff] (!%p992_p5)  ;;  %v758_v43 = vld [vmem:[%s1517_s6 + $0x38] sm:$0xff] (!%p992_p5) }
 0x143   : > { %637 = vst [vmem:[#allocation2 + $0x10] sm:$0xff] %v621_v41  ;;  %645 = vst [vmem:[#allocation2 + $0x50] sm:$0xff] %v629_v42  ;;  %v622_v51 = vadd.f32 %v1114_v49, %v397_v39  ;;  %v630_v52 = vadd.f32 %v1122_v50, %v405_v40  ;;  %v559_v53 = vpop.f32.mrb[3].mxu0  ;;  %v591_v54 = vpop.f32.mrb[3].mxu1  ;;  %v757_v42 = vld [vmem:[%s1517_s6 + $0x30] sm:$0xff] (!%p992_p5) }
 0x144   : > { %635 = vst [vmem:[#allocation2] sm:$0xff] %v619_v47  ;;  %643 = vst [vmem:[#allocation2 + $0x40] sm:$0xff] %v627_v48  ;;  %v620_v55 = vadd.f32 %v559_v53, %v395_v45  ;;  %v628_v56 = vadd.f32 %v591_v54, %v403_v46  ;;  %v760_v54 = vld [vmem:[%s1517_s6 + $0x48] sm:$0xff] (!%p992_p5) }
 0x145   : > { %638 = vst [vmem:[#allocation2 + $0x18] sm:$0xff] %v622_v51  ;;  %646 = vst [vmem:[#allocation2 + $0x58] sm:$0xff] %v630_v52  ;;  %v759_v51 = vld [vmem:[%s1517_s6 + $0x40] sm:$0xff] (!%p992_p5) }
 0x146   : > { %636 = vst [vmem:[#allocation2 + $0x8] sm:$0xff] %v620_v55  ;;  %644 = vst [vmem:[#allocation2 + $0x48] sm:$0xff] %v628_v56 }
 0x148   : > { %v1117_v61 = vpop.f32.mrb[4].mxu0  ;;  %v1125_v62 = vpop.f32.mrb[4].mxu1  ;;  %654 = sbr.rel (%p992_p5) target bundleno = 350 (0x15e), region = 81 }
 0x149   : > { %v625_v1 = vadd.f32 %v1117_v61, %v400_v57  ;;  %v633_v2 = vadd.f32 %v1125_v62, %v408_v58  ;;  %v572_v3 = vpop.f32.mrb[5].mxu0  ;;  %v604_v4 = vpop.f32.mrb[5].mxu1  ;;  %v761_v62 = vld [vmem:[%s1517_s6 + $0x50] sm:$0xff] (!%p992_p5) }
 0x14a   : > { %v623_v7 = vadd.f32 %v572_v3, %v398_v59  ;;  %v631_v8 = vadd.f32 %v604_v4, %v406_v60  ;;  %v1118_v9 = vpop.f32.mrb[6].mxu0  ;;  %v1126_v10 = vpop.f32.mrb[6].mxu1  ;;  %v657_v24 = vld [vmem:[#allocation2 + $0x10] sm:$0xff] (!%p992_p5) }
 0x14b   : > { %641 = vst [vmem:[#allocation2 + $0x30] sm:$0xff] %v625_v1  ;;  %649 = vst [vmem:[#allocation2 + $0x70] sm:$0xff] %v633_v2  ;;  %v626_v11 = vadd.f32 %v1118_v9, %v401_v63  ;;  %v634_v12 = vadd.f32 %v1126_v10, %v409_v0  ;;  %v575_v13 = vpop.f32.mrb[7].mxu0  ;;  %v607_v14 = vpop.f32.mrb[7].mxu1  ;;  %v655_v17 = vld [vmem:[#allocation2] sm:$0xff] (!%p992_p5)  ;;  %v665_v57 = vld [vmem:[#allocation2 + $0x50] sm:$0xff] (!%p992_p5) }
 0x14c   : > { %639 = vst [vmem:[#allocation2 + $0x20] sm:$0xff] %v623_v7  ;;  %647 = vst [vmem:[#allocation2 + $0x60] sm:$0xff] %v631_v8  ;;  %v624_v15 = vadd.f32 %v575_v13, %v399_v5  ;;  %v632_v16 = vadd.f32 %v607_v14, %v407_v6  ;;  %v767_v22 = vmul.f32 (!%p992_p5), 0.2375, %v655_v17  ;;  %v658_v25 = vld [vmem:[#allocation2 + $0x18] sm:$0xff] (!%p992_p5)  ;;  %v663_v49 = vld [vmem:[#allocation2 + $0x40] sm:$0xff] (!%p992_p5) }
 0x14d   : > { %642 = vst [vmem:[#allocation2 + $0x38] sm:$0xff] %v626_v11  ;;  %650 = vst [vmem:[#allocation2 + $0x78] sm:$0xff] %v634_v12  ;;  %v656_v18 = vld [vmem:[#allocation2 + $0x8] sm:$0xff] (!%p992_p5)  ;;  %v769_v28 = vmul.f32 (!%p992_p5), 0.2375, %v657_v24  ;;  %v1040_v29 = vpack.c.bf16 (!%p992_p5), %v658_v25, %v657_v24  ;;  %v666_v61 = vld [vmem:[#allocation2 + $0x58] sm:$0xff] (!%p992_p5) }
 0x14e   : > { %640 = vst [vmem:[#allocation2 + $0x28] sm:$0xff] %v624_v15  ;;  %648 = vst [vmem:[#allocation2 + $0x68] sm:$0xff] %v632_v16  ;;  %v1035_v20 = vpack.c.bf16 (!%p992_p5), %v656_v18, %v655_v17  ;;  %v768_v23 = vmul.f32 (!%p992_p5), 0.2375, %v656_v18  ;;  %v770_v30 = vmul.f32 (!%p992_p5), 0.2375, %v658_v25  ;;  %v783_v39 = vadd.f32 (!%p992_p5), %v767_v22, %v751_v19 }
 0x14f   : > { %1072 = vst [vmem:[%s1526_s18 + $0x8] sm:$0xff] %v1040_v29   ;;  %v785_v45 = vadd.f32 %v769_v28, %v753_v26  ;;  %v664_v50 = vld [vmem:[#allocation2 + $0x48] sm:$0xff]  ;;  %v775_v55 = vmul.f32 0.2375, %v663_v49  ;;  %v762_v63 = vld [vmem:[%s1517_s6 + $0x58] sm:$0xff]  ;;  %v1060_v3 = vpack.c.bf16 %v666_v61, %v665_v57  ;;  %v763_v7 = vld [vmem:[%s1517_s6 + $0x60] sm:$0xff] }
 0x150   : > { %1036 = vst [vmem:[%s1526_s18] sm:$0xff] %v1035_v20   ;;  %v784_v40 = vadd.f32 %v768_v23, %v752_v21  ;;  %v786_v46 = vadd.f32 %v770_v30, %v754_v27  ;;  %v1055_v53 = vpack.c.bf16 %v664_v50, %v663_v49  ;;  %v776_v56 = vmul.f32 0.2375, %v664_v50  ;;  %v764_v10 = vld [vmem:[%s1517_s6 + $0x68] sm:$0xff]  ;;  %v765_v16 = vld [vmem:[%s1517_s6 + $0x70] sm:$0xff]  ;;  %v766_v17 = vld [vmem:[%s1517_s6 + $0x78] sm:$0xff] }
 0x151   : > { %v777_v0 = vmul.f32 0.2375, %v665_v57  ;;  %v791_v1 = vadd.f32 %v775_v55, %v759_v51  ;;  %v778_v4 = vmul.f32 0.2375, %v666_v61  ;;  %1076 = vst [vmem:[%s1526_s18 + $0x28] sm:$0xff] %v1060_v3   ;;  %799 = vst [vmem:[%s1522_s28] sm:$0xff] %v783_v39 }
 0x152   : > { %v661_v38 = vld [vmem:[#allocation2 + $0x30] sm:$0xff]  ;;  %1075 = vst [vmem:[%s1526_s18 + $0x20] sm:$0xff] %v1055_v53   ;;  %v792_v2 = vadd.f32 %v776_v56, %v760_v54  ;;  %800 = vst [vmem:[%s1522_s28 + $0x8] sm:$0xff] %v784_v40 }
 0x153   : > { %v659_v31 = vld [vmem:[#allocation2 + $0x20] sm:$0xff]  ;;  %v773_v44 = vmul.f32 0.2375, %v661_v38  ;;  %v793_v8 = vadd.f32 %v777_v0, %v761_v62  ;;  %v669_v13 = vld [vmem:[#allocation2 + $0x70] sm:$0xff]  ;;  %v794_v14 = vadd.f32 %v778_v4, %v762_v63  ;;  %801 = vst [vmem:[%s1522_s28 + $0x10] sm:$0xff] %v785_v45  ;;  %802 = vst [vmem:[%s1522_s28 + $0x18] sm:$0xff] %v786_v46 }
 0x154   : > { %v771_v36 = vmul.f32 0.2375, %v659_v31  ;;  %v662_v41 = vld [vmem:[#allocation2 + $0x38] sm:$0xff]  ;;  %v667_v5 = vld [vmem:[#allocation2 + $0x60] sm:$0xff]  ;;  %v781_v18 = vmul.f32 0.2375, %v669_v13 }
 0x155   : > { %v660_v32 = vld [vmem:[#allocation2 + $0x28] sm:$0xff]  ;;  %v1050_v47 = vpack.c.bf16 %v662_v41, %v661_v38  ;;  %v774_v48 = vmul.f32 0.2375, %v662_v41  ;;  %v789_v59 = vadd.f32 %v773_v44, %v757_v42  ;;  %v779_v11 = vmul.f32 0.2375, %v667_v5  ;;  %v670_v15 = vld [vmem:[#allocation2 + $0x78] sm:$0xff] }
 0x156   : > { %v1045_v34 = vpack.c.bf16 %v660_v32, %v659_v31  ;;  %v772_v37 = vmul.f32 0.2375, %v660_v32  ;;  %v787_v52 = vadd.f32 %v771_v36, %v755_v33  ;;  %v668_v6 = vld [vmem:[#allocation2 + $0x68] sm:$0xff]  ;;  %v1070_v21 = vpack.c.bf16 %v670_v15, %v669_v13  ;;  %807 = vst [vmem:[%s1522_s28 + $0x40] sm:$0xff] %v791_v1  ;;  %808 = vst [vmem:[%s1522_s28 + $0x48] sm:$0xff] %v792_v2 }
 0x157   : > { %1074 = vst [vmem:[%s1526_s18 + $0x18] sm:$0xff] %v1050_v47   ;;  %v790_v60 = vadd.f32 %v774_v48, %v758_v43  ;;  %v1065_v9 = vpack.c.bf16 %v668_v6, %v667_v5  ;;  %v780_v12 = vmul.f32 0.2375, %v668_v6  ;;  %v795_v19 = vadd.f32 %v779_v11, %v763_v7  ;;  %805 = vst [vmem:[%s1522_s28 + $0x30] sm:$0xff] %v789_v59 }
 0x158   : > { %1073 = vst [vmem:[%s1526_s18 + $0x10] sm:$0xff] %v1045_v34   ;;  %v788_v58 = vadd.f32 %v772_v37, %v756_v35  ;;  %v782_v22 = vmul.f32 0.2375, %v670_v15  ;;  %803 = vst [vmem:[%s1522_s28 + $0x20] sm:$0xff] %v787_v52  ;;  %v797_v23 = vadd.f32 %v781_v18, %v765_v16 }
 0x159   : > { %1077 = vst [vmem:[%s1526_s18 + $0x30] sm:$0xff] %v1065_v9   ;;  %v796_v20 = vadd.f32 %v780_v12, %v764_v10  ;;  %806 = vst [vmem:[%s1522_s28 + $0x38] sm:$0xff] %v790_v60 }
 0x15a   : > { %804 = vst [vmem:[%s1522_s28 + $0x28] sm:$0xff] %v788_v58  ;;  %809 = vst [vmem:[%s1522_s28 + $0x50] sm:$0xff] %v793_v8  ;;  %v798_v24 = vadd.f32 %v782_v22, %v766_v17 }
 0x15b   : > { %810 = vst [vmem:[%s1522_s28 + $0x58] sm:$0xff] %v794_v14  ;;  %1078 = vst [vmem:[%s1526_s18 + $0x38] sm:$0xff] %v1070_v21  }
 0x15c   : > { %811 = vst [vmem:[%s1522_s28 + $0x60] sm:$0xff] %v795_v19  ;;  %812 = vst [vmem:[%s1522_s28 + $0x68] sm:$0xff] %v796_v20 }
 0x15d   : > { %813 = vst [vmem:[%s1522_s28 + $0x70] sm:$0xff] %v797_v23  ;;  %814 = vst [vmem:[%s1522_s28 + $0x78] sm:$0xff] %v798_v24 }
 0x15e PF: > { %s1031_s20 = sshll.u32 %s1347_s21, 10  ;;  %s834_s6 = sshll.u32 %s1526_s18, 4  ;;  %s1599_s6 = int_to_ptr.vmem [resolvable:$true] %s834_s6 }
 0x15f   : > { %s1596_s9 = scalar_lea.hbm %s1664_s3, %s1031_s20  ;;  %s1603_s29 = scalar_lea.sflag [#allocation5], %s328_s13 }
 0x160   : > { %s1249_s28 = scalar_lea.vmem %s1599_s6, 1024  ;;  %s1362_s21 = smov [#allocation4]  }
 0x161   : > { %p1250_p6 = scmp.ne.s32.totalorder %s1599_s6, %s1249_s28  ;;  %s1253_s0 = sshll.u32 %s1362_s21, 4  ;;  %s1254_s0 = int_to_ptr.vmem [resolvable:$false] %s1253_s0 }
 0x162   : > { %s1255_s5 = scalar_lea.vmem %s1254_s0, 2048  ;;  %p1256_p10 = scmp.lt.s32.totalorder %s1599_s6, %s1254_s0 }
 0x163   : > { %p1251_p8 = pnand %p1250_p6, %p1462_p7  ;;  %p1257_p11 = scmp.lt.s32.totalorder %s1255_s5, %s1249_s28 }
 0x165   : > { %p1252_p9 = pneg %p1251_p8  ;;  %p1258_p13 = por %p1257_p11, %p1256_p10 }
 0x167   : > { %p1259_p0 = pnand %p1258_p13, %p1252_p9 }
 0x169   : > { %1262 = shalt.err (!%p1259_p0)
}
 0x16a   : > { %s1263_s13 = scalar_lea.hbm %s1596_s9, 1024  ;;  %s1267_s25 = scalar_lea.hbm %s1664_s3, 2048 }
 0x16b   : > { %p1264_p1 = scmp.ne.s32.totalorder %s1596_s9, %s1263_s13  ;;  %p1268_p4 = scmp.lt.u32.totalorder %s1596_s9, %s1664_s3 }
 0x16c   : > { %p1269_p5 = scmp.lt.u32.totalorder %s1267_s25, %s1263_s13  ;;  %p1271_p8 = scmp.lt.u32.totalorder %s1263_s13, %s1596_s9 }
 0x16d   : > { %p1265_p2 = pnand %p1264_p1, %p1462_p7 }
 0x16e   : > { %p1270_p6 = por %p1269_p5, %p1268_p4 }
 0x16f   : > { %p1266_p3 = pneg %p1265_p2 }
 0x170   : > { %p1272_p9 = por %p1271_p8, %p1270_p6 }
 0x172   : > { %p1273_p10 = pnand %p1272_p9, %p1266_p3 }
 0x174   : > { %1276 = shalt.err (!%p1273_p10)
}
 0x175   : > { %s1363_s20 = smov 64   ;;  %s1364_s27 = smov 4  }
 0x176   : > { %1143 = dma.vmem_to_hbm [thread:$0]  (%p1462_p7), %s1599_s6, 1024, %s1596_s9, %s1603_s29, %s1363_s20, %s1363_s20, %s1364_s27  }
 0x177 PF: > { %p1149_p11 = scmp.ge.s32.totalorder %s1359_s24, 2  ;;  %s853_s8 = sand.u32 1, %s1323_s15  }
 0x178   : > { %s854_s28 = scalar_lea.sflag [#allocation5], %s853_s8 }
 0x179   : > { %p1146_p13 = pnand %p1149_p11, %p1470_p12 }
 0x17b   : > { %1318 = dma.done.wait (!%p1146_p13), %s854_s28, 1024  }
 0x17c   : > { %1320 = vsyncadd (!%p1146_p13), %s854_s28, 4294966272  ;;  %s18_s24 = sadd.s32 1, %s1359_s24   ;;  %s1675_s7 = sld [smem:[#allocation7_spill]] }
 0x17d   : > { %p15_p0 = scmp.ge.s32.totalorder %s18_s24, 6   ;;  %s1676_s9 = sld [smem:[#allocation8_spill]] }
 0x17e   : > { %s1677_s15 = smov %s1327_s16  ;;  %s1678_s16 = smov %s1331_s17 }
 0x17f   : > { %s1679_s17 = smov %s1475_s11  ;;  %s1680_s18 = smov %s1339_s19 }
 0x180   : > { %s1681_s19 = smov %s1478_s12  ;;  %s1682_s20 = smov %s1351_s22 }
 0x181   : > { %s1683_s21 = smov %s1355_s23  ;;  %17 = sbr.rel (!%p15_p0) target bundleno = 8 (0x8), region = 137 }
 0x182   : > { %s1684_s22 = smov %s1675_s7 }
 0x183   : > { %s1685_s23 = smov %s1676_s9 }
 0x188   :  { %867 = vsyncpa [#allocation5], 1 }
 0x189   :  { %869 = vsyncpa [#allocation5 + $0x1], 1 }

// kernel: s2gc_aggregate.4
= control target key start
LH: loop header
LB: loop body
LE: loop exit
PB: predicated region body
PF: predicated region fallthrough
CT: control target
= control target key end

     0   :  { %s1278_s15 = smov 0   ;;  %s1280_s16 = smov 0   ;;  %s1462_s0 = inlined_call_operand.vmem [shape: bf16[256,256], index: 0, kind: input, shape index: {}]   ;;  %s1463_s1 = inlined_call_operand.vmem [shape: bf16[256,128], index: 1, kind: input, shape index: {}]   ;;  %s1464_s2 = inlined_call_operand.vmem [shape: f32[256,128], index: 2, kind: input, shape index: {}, may-alias: {2,4}]   ;;  %s1465_s3 = inlined_call_operand.vmem [shape: bf16[256,128], index: 3, kind: output, shape index: {0}]   ;;  %s1466_s4 = inlined_call_operand.vmem [shape: f32[256,128], index: 4, kind: output, shape index: {1}, may-alias: {2,4}]  }
   0x1   :  { %s1282_s17 = smov 0   ;;  %s1284_s18 = smov 0  }
   0x2   :  { %s1286_s19 = smov 0   ;;  %s1288_s20 = smov 0  }
   0x3   :  { %s1290_s21 = smov 0  }
   0x4 LB: > { %s24_s22 = sadd.s32 1, %s1242_s19  ;;  %s27_s23 = sadd.s32 1, %s1246_s20  ;;  %s1250_s21 = sphi %s1290_s21, %s15_s21   ;;  %s1246_s20 = sphi %s1288_s20, %s1472_s20   ;;  %s1242_s19 = sphi %s1286_s19, %s1471_s19   ;;  %s1238_s18 = sphi %s1284_s18, %s1470_s18   ;;  %s1234_s17 = sphi %s1282_s17, %s1469_s17   ;;  %s1230_s16 = sphi %s1280_s16, %s1468_s16   ;;  %s1226_s15 = sphi %s1278_s15, %s1467_s15  }
   0x5   : > { %p25_p0 = scmp.ge.s32.totalorder %s24_s22, 2  ;;  %p43_p1 = scmp.ne.s32.totalorder %s1230_s16, %s1226_s15 }
   0x6   : > { %p44_p2 = scmp.eq.s32.totalorder %s1250_s21, 0  ;;  %s36_s27 = sadd.s32 1, %s1230_s16 }
   0x7   : > { %s1474_s22 = smov (%p25_p0, %s24_s22), 0  ;;  %s1476_s23 = smov (!%p25_p0, %s27_s23), %s1246_s20 }
   0x8   : > { %p45_p3 = por %p44_p2, %p43_p1  ;;  %p29_p4 = scmp.ge.s32.totalorder %s1476_s23, 2 }
   0x9   : > { %s32_s24 = ssub.s32 %s1242_s19, %s1474_s22  ;;  %p944_p6 = scmp.ge.s32.totalorder %s1250_s21, 4 }
   0xa   : > { %s1478_s23 = smov (%p29_p4, %s1476_s23), 0 }
   0xb   : > { %s31_s25 = ssub.s32 %s1246_s20, %s1478_s23  ;;  %171 = sbr.rel (%p944_p6) target bundleno = 34 (0x22), region = 20 }
   0xc   : > { %s33_s26 = sor.u32 %s32_s24, %s31_s25 }
   0xd   : > { %p34_p5 = scmp.eq.s32.totalorder %s33_s26, 0 }
   0xf   : > { %s1329_s28 = scalar_select %p34_p5, %s1230_s16, %s36_s27  }
  0x12   : > { %174 = sbr.rel (!%p45_p3) target bundleno = 34 (0x22), region = 24  ;;  %s176_s29 = sand.u32 (%p45_p3), 1, %s1230_s16  }
  0x13   : > { %s995_s30 = sshll.u32 (%p45_p3), %s1246_s20, 5  ;;  %s945_s5 = sshll.u32 (%p45_p3), %s176_s29, 6 }
  0x14   : > { %s181_s6 = sadd.s32 (%p45_p3), %s1242_s19, %s995_s30  ;;  %s178_s11 = scalar_lea.vmem (%p45_p3), [#allocation3], %s945_s5 }
  0x15   : > { %s948_s7 = sshll.u32 (%p45_p3), %s181_s6, 2 }
  0x16   : > { %s1338_s10 = scalar_lea.vmem (%p45_p3), %s1462_s0, %s948_s7 }
  0x17   : > { %v199_v0 = vld [vmem:[%s1338_s10] sm:$0xf] (%p45_p3)  ;;  %v201_v1 = vld [vmem:[%s1338_s10 + $0x8] sm:$0xf] (%p45_p3)  ;;  %v203_v2 = vld [vmem:[%s1338_s10 + $0x10] sm:$0xf] (%p45_p3) }
  0x18   : > { %200 = vst [vmem:[%s178_s11] sm:$0xf] (%p45_p3), %v199_v0  ;;  %202 = vst [vmem:[%s178_s11 + $0x4] sm:$0xf] (%p45_p3), %v201_v1  ;;  %v205_v3 = vld [vmem:[%s1338_s10 + $0x18] sm:$0xf] (%p45_p3) }
  0x19   : > { %204 = vst [vmem:[%s178_s11 + $0x8] sm:$0xf] %v203_v2  ;;  %v207_v4 = vld [vmem:[%s1338_s10 + $0x20] sm:$0xf]  ;;  %v209_v5 = vld [vmem:[%s1338_s10 + $0x28] sm:$0xf] }
  0x1a   : > { %206 = vst [vmem:[%s178_s11 + $0xc] sm:$0xf] %v205_v3  ;;  %208 = vst [vmem:[%s178_s11 + $0x10] sm:$0xf] %v207_v4  ;;  %v211_v6 = vld [vmem:[%s1338_s10 + $0x30] sm:$0xf] }
  0x1b   : > { %210 = vst [vmem:[%s178_s11 + $0x14] sm:$0xf] %v209_v5  ;;  %v213_v7 = vld [vmem:[%s1338_s10 + $0x38] sm:$0xf]  ;;  %v215_v8 = vld [vmem:[%s1338_s10 + $0x40] sm:$0xf] }
  0x1c   : > { %212 = vst [vmem:[%s178_s11 + $0x18] sm:$0xf] %v211_v6  ;;  %214 = vst [vmem:[%s178_s11 + $0x1c] sm:$0xf] %v213_v7  ;;  %v217_v9 = vld [vmem:[%s1338_s10 + $0x48] sm:$0xf] }
  0x1d   : > { %216 = vst [vmem:[%s178_s11 + $0x20] sm:$0xf] %v215_v8  ;;  %v219_v10 = vld [vmem:[%s1338_s10 + $0x50] sm:$0xf]  ;;  %v221_v11 = vld [vmem:[%s1338_s10 + $0x58] sm:$0xf] }
  0x1e   : > { %218 = vst [vmem:[%s178_s11 + $0x24] sm:$0xf] %v217_v9  ;;  %220 = vst [vmem:[%s178_s11 + $0x28] sm:$0xf] %v219_v10  ;;  %v223_v12 = vld [vmem:[%s1338_s10 + $0x60] sm:$0xf] }
  0x1f   : > { %222 = vst [vmem:[%s178_s11 + $0x2c] sm:$0xf] %v221_v11  ;;  %v225_v13 = vld [vmem:[%s1338_s10 + $0x68] sm:$0xf]  ;;  %v227_v14 = vld [vmem:[%s1338_s10 + $0x70] sm:$0xf] }
  0x20   : > { %224 = vst [vmem:[%s178_s11 + $0x30] sm:$0xf] %v223_v12  ;;  %226 = vst [vmem:[%s178_s11 + $0x34] sm:$0xf] %v225_v13  ;;  %v229_v15 = vld [vmem:[%s1338_s10 + $0x78] sm:$0xf] }
  0x21   : > { %228 = vst [vmem:[%s178_s11 + $0x38] sm:$0xf] %v227_v14  ;;  %230 = vst [vmem:[%s178_s11 + $0x3c] sm:$0xf] %v229_v15 }
  0x22 PF: > { %p949_p7 = scmp.ge.s32.totalorder %s1250_s21, 1  ;;  %p293_p8 = scmp.lt.s32.totalorder %s1250_s21, 5 }
  0x24   : > { %p294_p9 = pnand %p949_p7, %p293_p8 }
  0x25   : > { %s300_s12 = sand.u32 (!%p294_p9), 1, %s1226_s15   ;;  %s951_s13 = sshll.u32 (!%p294_p9), %s1238_s18, 4 }
  0x26   : > { %297 = sbr.rel (%p294_p9) target bundleno = 333 (0x14d), region = 69  ;;  %s950_s14 = sshll.u32 (!%p294_p9), %s300_s12, 6 }
  0x27   : > { %p337_p10 = scmp.lt.s32.totalorder (!%p294_p9), %s951_s13, 31  ;;  %s1375_s18 = scalar_lea.vmem (!%p294_p9), [#allocation3], %s950_s14 }
  0x28   : > { %p957_p11 = scmp.ne.s32.totalorder (!%p294_p9), %s1234_s17, 0 }
  0x2d   : > { %s1480_s13 = smov (!%p337_p10, %s951_s13), 31  ;;  %358 = sbr.rel (%p957_p11) target bundleno = 55 (0x37), region = 77 }
  0x2e   : > { %s952_s24 = sshll.u32 %s1480_s13, 3  ;;  %s954_s25 = sshll.u32 %s1480_s13, 2  ;;  %v1252_v16 = vmov (!%p957_p11), 0.0  }
  0x2f   : > { %s1363_s29 = scalar_lea.vmem %s1464_s2, %s952_s24  ;;  %s1368_s6 = scalar_lea.vmem %s1465_s3, %s954_s25  ;;  %359 = vst [vmem:[#allocation2] sm:$0xff] (!%p957_p11), %v1252_v16  ;;  %360 = vst [vmem:[#allocation2 + $0x8] sm:$0xff] (!%p957_p11), %v1252_v16 }
  0x30   : > { %s1373_s15 = scalar_lea.vmem %s1466_s4, %s952_s24  ;;  %361 = vst [vmem:[#allocation2 + $0x10] sm:$0xff] (!%p957_p11), %v1252_v16  ;;  %362 = vst [vmem:[#allocation2 + $0x18] sm:$0xff] (!%p957_p11), %v1252_v16 }
  0x31   : > { %363 = vst [vmem:[#allocation2 + $0x20] sm:$0xff] (!%p957_p11), %v1252_v16  ;;  %364 = vst [vmem:[#allocation2 + $0x28] sm:$0xff] (!%p957_p11), %v1252_v16 }
  0x32   : > { %365 = vst [vmem:[#allocation2 + $0x30] sm:$0xff] (!%p957_p11), %v1252_v16  ;;  %366 = vst [vmem:[#allocation2 + $0x38] sm:$0xff] (!%p957_p11), %v1252_v16 }
  0x33   : > { %367 = vst [vmem:[#allocation2 + $0x40] sm:$0xff] (!%p957_p11), %v1252_v16  ;;  %368 = vst [vmem:[#allocation2 + $0x48] sm:$0xff] (!%p957_p11), %v1252_v16 }
  0x34   : > { %369 = vst [vmem:[#allocation2 + $0x50] sm:$0xff] %v1252_v16  ;;  %370 = vst [vmem:[#allocation2 + $0x58] sm:$0xff] %v1252_v16 }
  0x35   : > { %371 = vst [vmem:[#allocation2 + $0x60] sm:$0xff] %v1252_v16  ;;  %372 = vst [vmem:[#allocation2 + $0x68] sm:$0xff] %v1252_v16 }
  0x36   : > { %373 = vst [vmem:[#allocation2 + $0x70] sm:$0xff] %v1252_v16  ;;  %374 = vst [vmem:[#allocation2 + $0x78] sm:$0xff] %v1252_v16 }
  0x37 PF: > { %s958_s9 = sshll.u32 %s1234_s17, 7  ;;  %v1188_v17 = vld [vmem:[%s1375_s18] sm:$0xff]   ;;  %v1190_v27 = vld [vmem:[%s1375_s18 + $0x8] sm:$0xff]   ;;  %v1192_v29 = vld [vmem:[%s1375_s18 + $0x10] sm:$0xff]   ;;  %p976_p12 = scmp.ne.s32.totalorder %s1234_s17, 1 }
  0x38   : > { %s376_s10 = sshra.s32 %s958_s9, 3  ;;  %v1189_v18 = vld [vmem:[%s1375_s18 + $0x20] sm:$0xff]   ;;  %1091 = vmatprep.mubr.bf16.mxu0 %v1188_v17  ;;  %v1191_v28 = vld [vmem:[%s1375_s18 + $0x28] sm:$0xff]   ;;  %v1193_v30 = vld [vmem:[%s1375_s18 + $0x30] sm:$0xff]  }
  0x39   : > { %s959_s11 = sshll.u32 %s376_s10, 2  ;;  %1099 = vmatprep.mubr.bf16.mxu1 %v1189_v18  ;;  %v1194_v31 = vld [vmem:[%s1375_s18 + $0x18] sm:$0xff]   ;;  %v396_v35 = vld [vmem:[#allocation2] sm:$0xff]  ;;  %v397_v45 = vld [vmem:[#allocation2 + $0x8] sm:$0xff] }
  0x3a   : > { %s1384_s14 = scalar_lea.vmem %s1463_s1, %s959_s11  ;;  %v1195_v32 = vld [vmem:[%s1375_s18 + $0x38] sm:$0xff]   ;;  %v398_v33 = vld [vmem:[#allocation2 + $0x10] sm:$0xff] }
  0x3b   : > { %v1180_v19 = vld [vmem:[%s1384_s14] sm:$0xff]   ;;  %v1181_v20 = vld [vmem:[%s1384_s14 + $0x8] sm:$0xff]   ;;  %v1182_v21 = vld [vmem:[%s1384_s14 + $0x10] sm:$0xff]  }
  0x3c   : > { %1075 = vmatprep.subr.bf16.mxu0 %v1180_v19  ;;  %1107 = vmatprep.subr.bf16.mxu1 %v1180_v19  ;;  %v1183_v22 = vld [vmem:[%s1384_s14 + $0x18] sm:$0xff]   ;;  %v1184_v23 = vld [vmem:[%s1384_s14 + $0x20] sm:$0xff]   ;;  %v1185_v24 = vld [vmem:[%s1384_s14 + $0x28] sm:$0xff]  }
  0x3d   : > { %1076 = vmatpush3.bf16.msra.mxu0 %v1180_v19  ;;  %1115 = vmatpush3.bf16.msra.mxu1 %v1180_v19  ;;  %v1186_v25 = vld [vmem:[%s1384_s14 + $0x30] sm:$0xff]   ;;  %v1187_v26 = vld [vmem:[%s1384_s14 + $0x38] sm:$0xff]   ;;  %v404_v36 = vld [vmem:[#allocation2 + $0x40] sm:$0xff] }
  0x3e   : > { %1077 = vmatprep.subr.bf16.mxu0 %v1181_v20  ;;  %1108 = vmatprep.subr.bf16.mxu1 %v1181_v20  ;;  %v406_v34 = vld [vmem:[#allocation2 + $0x50] sm:$0xff]  ;;  %v399_v39 = vld [vmem:[#allocation2 + $0x18] sm:$0xff]  ;;  %v405_v46 = vld [vmem:[#allocation2 + $0x48] sm:$0xff] }
  0x3f   : > { %v407_v40 = vld [vmem:[#allocation2 + $0x58] sm:$0xff]  ;;  %v402_v57 = vld [vmem:[#allocation2 + $0x30] sm:$0xff]  ;;  %v400_v59 = vld [vmem:[#allocation2 + $0x20] sm:$0xff] }
  0x40   : > { %v410_v58 = vld [vmem:[#allocation2 + $0x70] sm:$0xff]  ;;  %v408_v60 = vld [vmem:[#allocation2 + $0x60] sm:$0xff]  ;;  %v403_v63 = vld [vmem:[#allocation2 + $0x38] sm:$0xff] }
  0x41   : > { %1078 = vmatpush3.bf16.msra.mxu0 %v1181_v20  ;;  %1116 = vmatpush3.bf16.msra.mxu1 %v1181_v20  ;;  %v411_v0 = vld [vmem:[#allocation2 + $0x78] sm:$0xff]  ;;  %v401_v5 = vld [vmem:[#allocation2 + $0x28] sm:$0xff]  ;;  %v753_v19 = vld [vmem:[%s1363_s29] sm:$0xff] (!%p976_p12) }
  0x42   : > { %1079 = vmatprep.subr.bf16.mxu0 %v1182_v21  ;;  %1109 = vmatprep.subr.bf16.mxu1 %v1182_v21  ;;  %v409_v6 = vld [vmem:[#allocation2 + $0x68] sm:$0xff] }
  0x45   : > { %1080 = vmatpush3.bf16.msra.mxu0 %v1182_v21  ;;  %1117 = vmatpush3.bf16.msra.mxu1 %v1182_v21  ;;  %v754_v21 = vld [vmem:[%s1363_s29 + $0x8] sm:$0xff] (!%p976_p12) }
  0x46   : > { %1081 = vmatprep.subr.bf16.mxu0 %v1183_v22  ;;  %1110 = vmatprep.subr.bf16.mxu1 %v1183_v22 }
  0x49   : > { %1082 = vmatpush3.bf16.msra.mxu0 %v1183_v22  ;;  %1118 = vmatpush3.bf16.msra.mxu1 %v1183_v22 }
  0x4a   : > { %1083 = vmatprep.subr.bf16.mxu0 %v1184_v23  ;;  %1111 = vmatprep.subr.bf16.mxu1 %v1184_v23 }
  0x4d   : > { %1084 = vmatpush3.bf16.msra.mxu0 %v1184_v23  ;;  %1119 = vmatpush3.bf16.msra.mxu1 %v1184_v23 }
  0x4e   : > { %1085 = vmatprep.subr.bf16.mxu0 %v1185_v24  ;;  %1112 = vmatprep.subr.bf16.mxu1 %v1185_v24 }
  0x51   : > { %1086 = vmatpush3.bf16.msra.mxu0 %v1185_v24  ;;  %1120 = vmatpush3.bf16.msra.mxu1 %v1185_v24 }
  0x52   : > { %1087 = vmatprep.subr.bf16.mxu0 %v1186_v25  ;;  %1113 = vmatprep.subr.bf16.mxu1 %v1186_v25 }
  0x55   : > { %1088 = vmatpush3.bf16.msra.mxu0 %v1186_v25  ;;  %1121 = vmatpush3.bf16.msra.mxu1 %v1186_v25 }
  0x56   : > { %1089 = vmatprep.subr.bf16.mxu0 %v1187_v26  ;;  %1114 = vmatprep.subr.bf16.mxu1 %v1187_v26 }
  0x59   : > { %1090 = vmatpush3.bf16.msra.mxu0 %v1187_v26  ;;  %1122 = vmatpush3.bf16.msra.mxu1 %v1187_v26  ;;  %v755_v26 = vld [vmem:[%s1363_s29 + $0x10] sm:$0xff] (!%p976_p12) }
  0x5c   : > { %1092 = vmatmul.mubr.bf16.vlgmr.msra.gmra.mrb[0].mxu0 %v1190_v27  ;;  %1100 = vmatmul.mubr.bf16.vlgmr.msra.gmra.mrb[0].mxu1 %v1191_v28  ;;  %v756_v27 = vld [vmem:[%s1363_s29 + $0x18] sm:$0xff] (!%p976_p12) }
  0x5d   : > { %1095 = vmatprep.mubr.bf16.mxu0 %v1192_v29  ;;  %1103 = vmatprep.mubr.bf16.mxu1 %v1193_v30 }
  0x64   : > { %1096 = vmatmul.mubr.bf16.gmra.mrb[4].mxu0 %v1194_v31  ;;  %1104 = vmatmul.mubr.bf16.gmra.mrb[4].mxu1 %v1195_v32 }
 0x12f   : > { %v1093_v37 = vpop.f32.mrb[0].mxu0  ;;  %v1101_v38 = vpop.f32.mrb[0].mxu1 }
 0x130   : > { %v623_v41 = vadd.f32 %v1093_v37, %v398_v33  ;;  %v631_v42 = vadd.f32 %v1101_v38, %v406_v34  ;;  %v558_v43 = vpop.f32.mrb[1].mxu0  ;;  %v590_v44 = vpop.f32.mrb[1].mxu1  ;;  %v757_v33 = vld [vmem:[%s1363_s29 + $0x20] sm:$0xff] (!%p976_p12) }
 0x131   : > { %v621_v47 = vadd.f32 %v558_v43, %v396_v35  ;;  %v629_v48 = vadd.f32 %v590_v44, %v404_v36  ;;  %v1094_v49 = vpop.f32.mrb[2].mxu0  ;;  %v1102_v50 = vpop.f32.mrb[2].mxu1  ;;  %v758_v35 = vld [vmem:[%s1363_s29 + $0x28] sm:$0xff] (!%p976_p12)  ;;  %v760_v43 = vld [vmem:[%s1363_s29 + $0x38] sm:$0xff] (!%p976_p12) }
 0x132   : > { %639 = vst [vmem:[#allocation2 + $0x10] sm:$0xff] %v623_v41  ;;  %647 = vst [vmem:[#allocation2 + $0x50] sm:$0xff] %v631_v42  ;;  %v624_v51 = vadd.f32 %v1094_v49, %v399_v39  ;;  %v632_v52 = vadd.f32 %v1102_v50, %v407_v40  ;;  %v561_v53 = vpop.f32.mrb[3].mxu0  ;;  %v593_v54 = vpop.f32.mrb[3].mxu1  ;;  %v759_v42 = vld [vmem:[%s1363_s29 + $0x30] sm:$0xff] (!%p976_p12) }
 0x133   : > { %637 = vst [vmem:[#allocation2] sm:$0xff] %v621_v47  ;;  %645 = vst [vmem:[#allocation2 + $0x40] sm:$0xff] %v629_v48  ;;  %v622_v55 = vadd.f32 %v561_v53, %v397_v45  ;;  %v630_v56 = vadd.f32 %v593_v54, %v405_v46  ;;  %v762_v54 = vld [vmem:[%s1363_s29 + $0x48] sm:$0xff] (!%p976_p12) }
 0x134   : > { %640 = vst [vmem:[#allocation2 + $0x18] sm:$0xff] %v624_v51  ;;  %648 = vst [vmem:[#allocation2 + $0x58] sm:$0xff] %v632_v52  ;;  %v761_v51 = vld [vmem:[%s1363_s29 + $0x40] sm:$0xff] (!%p976_p12) }
 0x135   : > { %638 = vst [vmem:[#allocation2 + $0x8] sm:$0xff] %v622_v55  ;;  %646 = vst [vmem:[#allocation2 + $0x48] sm:$0xff] %v630_v56 }
 0x137   : > { %v1097_v61 = vpop.f32.mrb[4].mxu0  ;;  %v1105_v62 = vpop.f32.mrb[4].mxu1  ;;  %656 = sbr.rel (%p976_p12) target bundleno = 333 (0x14d), region = 81 }
 0x138   : > { %v627_v1 = vadd.f32 %v1097_v61, %v402_v57  ;;  %v635_v2 = vadd.f32 %v1105_v62, %v410_v58  ;;  %v574_v3 = vpop.f32.mrb[5].mxu0  ;;  %v606_v4 = vpop.f32.mrb[5].mxu1  ;;  %v763_v62 = vld [vmem:[%s1363_s29 + $0x50] sm:$0xff] (!%p976_p12) }
 0x139   : > { %v625_v7 = vadd.f32 %v574_v3, %v400_v59  ;;  %v633_v8 = vadd.f32 %v606_v4, %v408_v60  ;;  %v1098_v9 = vpop.f32.mrb[6].mxu0  ;;  %v1106_v10 = vpop.f32.mrb[6].mxu1  ;;  %v659_v24 = vld [vmem:[#allocation2 + $0x10] sm:$0xff] (!%p976_p12) }
 0x13a   : > { %643 = vst [vmem:[#allocation2 + $0x30] sm:$0xff] %v627_v1  ;;  %651 = vst [vmem:[#allocation2 + $0x70] sm:$0xff] %v635_v2  ;;  %v628_v11 = vadd.f32 %v1098_v9, %v403_v63  ;;  %v636_v12 = vadd.f32 %v1106_v10, %v411_v0  ;;  %v577_v13 = vpop.f32.mrb[7].mxu0  ;;  %v609_v14 = vpop.f32.mrb[7].mxu1  ;;  %v657_v17 = vld [vmem:[#allocation2] sm:$0xff] (!%p976_p12)  ;;  %v667_v57 = vld [vmem:[#allocation2 + $0x50] sm:$0xff] (!%p976_p12) }
 0x13b   : > { %641 = vst [vmem:[#allocation2 + $0x20] sm:$0xff] %v625_v7  ;;  %649 = vst [vmem:[#allocation2 + $0x60] sm:$0xff] %v633_v8  ;;  %v626_v15 = vadd.f32 %v577_v13, %v401_v5  ;;  %v634_v16 = vadd.f32 %v609_v14, %v409_v6  ;;  %v769_v22 = vmul.f32 (!%p976_p12), 0.2375, %v657_v17  ;;  %v660_v25 = vld [vmem:[#allocation2 + $0x18] sm:$0xff] (!%p976_p12)  ;;  %v665_v49 = vld [vmem:[#allocation2 + $0x40] sm:$0xff] (!%p976_p12) }
 0x13c   : > { %644 = vst [vmem:[#allocation2 + $0x38] sm:$0xff] %v628_v11  ;;  %652 = vst [vmem:[#allocation2 + $0x78] sm:$0xff] %v636_v12  ;;  %v658_v18 = vld [vmem:[#allocation2 + $0x8] sm:$0xff] (!%p976_p12)  ;;  %v771_v28 = vmul.f32 (!%p976_p12), 0.2375, %v659_v24  ;;  %v1020_v29 = vpack.c.bf16 (!%p976_p12), %v660_v25, %v659_v24  ;;  %v668_v61 = vld [vmem:[#allocation2 + $0x58] sm:$0xff] (!%p976_p12) }
 0x13d   : > { %642 = vst [vmem:[#allocation2 + $0x28] sm:$0xff] %v626_v15  ;;  %650 = vst [vmem:[#allocation2 + $0x68] sm:$0xff] %v634_v16  ;;  %v1015_v20 = vpack.c.bf16 (!%p976_p12), %v658_v18, %v657_v17  ;;  %v770_v23 = vmul.f32 (!%p976_p12), 0.2375, %v658_v18  ;;  %v772_v30 = vmul.f32 (!%p976_p12), 0.2375, %v660_v25  ;;  %v785_v39 = vadd.f32 (!%p976_p12), %v769_v22, %v753_v19 }
 0x13e   : > { %1052 = vst [vmem:[%s1368_s6 + $0x8] sm:$0xff] %v1020_v29   ;;  %v787_v45 = vadd.f32 %v771_v28, %v755_v26  ;;  %v666_v50 = vld [vmem:[#allocation2 + $0x48] sm:$0xff]  ;;  %v777_v55 = vmul.f32 0.2375, %v665_v49  ;;  %v764_v63 = vld [vmem:[%s1363_s29 + $0x58] sm:$0xff]  ;;  %v1040_v3 = vpack.c.bf16 %v668_v61, %v667_v57  ;;  %v765_v7 = vld [vmem:[%s1363_s29 + $0x60] sm:$0xff] }
 0x13f   : > { %1016 = vst [vmem:[%s1368_s6] sm:$0xff] %v1015_v20   ;;  %v786_v40 = vadd.f32 %v770_v23, %v754_v21  ;;  %v788_v46 = vadd.f32 %v772_v30, %v756_v27  ;;  %v1035_v53 = vpack.c.bf16 %v666_v50, %v665_v49  ;;  %v778_v56 = vmul.f32 0.2375, %v666_v50  ;;  %v766_v10 = vld [vmem:[%s1363_s29 + $0x68] sm:$0xff]  ;;  %v767_v16 = vld [vmem:[%s1363_s29 + $0x70] sm:$0xff]  ;;  %v768_v17 = vld [vmem:[%s1363_s29 + $0x78] sm:$0xff] }
 0x140   : > { %v779_v0 = vmul.f32 0.2375, %v667_v57  ;;  %v793_v1 = vadd.f32 %v777_v55, %v761_v51  ;;  %v780_v4 = vmul.f32 0.2375, %v668_v61  ;;  %1056 = vst [vmem:[%s1368_s6 + $0x28] sm:$0xff] %v1040_v3   ;;  %801 = vst [vmem:[%s1373_s15] sm:$0xff] %v785_v39 }
 0x141   : > { %v663_v38 = vld [vmem:[#allocation2 + $0x30] sm:$0xff]  ;;  %1055 = vst [vmem:[%s1368_s6 + $0x20] sm:$0xff] %v1035_v53   ;;  %v794_v2 = vadd.f32 %v778_v56, %v762_v54  ;;  %802 = vst [vmem:[%s1373_s15 + $0x8] sm:$0xff] %v786_v40 }
 0x142   : > { %v661_v31 = vld [vmem:[#allocation2 + $0x20] sm:$0xff]  ;;  %v775_v44 = vmul.f32 0.2375, %v663_v38  ;;  %v795_v8 = vadd.f32 %v779_v0, %v763_v62  ;;  %v671_v13 = vld [vmem:[#allocation2 + $0x70] sm:$0xff]  ;;  %v796_v14 = vadd.f32 %v780_v4, %v764_v63  ;;  %803 = vst [vmem:[%s1373_s15 + $0x10] sm:$0xff] %v787_v45  ;;  %804 = vst [vmem:[%s1373_s15 + $0x18] sm:$0xff] %v788_v46 }
 0x143   : > { %v773_v36 = vmul.f32 0.2375, %v661_v31  ;;  %v664_v41 = vld [vmem:[#allocation2 + $0x38] sm:$0xff]  ;;  %v669_v5 = vld [vmem:[#allocation2 + $0x60] sm:$0xff]  ;;  %v783_v18 = vmul.f32 0.2375, %v671_v13 }
 0x144   : > { %v662_v32 = vld [vmem:[#allocation2 + $0x28] sm:$0xff]  ;;  %v1030_v47 = vpack.c.bf16 %v664_v41, %v663_v38  ;;  %v776_v48 = vmul.f32 0.2375, %v664_v41  ;;  %v791_v59 = vadd.f32 %v775_v44, %v759_v42  ;;  %v781_v11 = vmul.f32 0.2375, %v669_v5  ;;  %v672_v15 = vld [vmem:[#allocation2 + $0x78] sm:$0xff] }
 0x145   : > { %v1025_v34 = vpack.c.bf16 %v662_v32, %v661_v31  ;;  %v774_v37 = vmul.f32 0.2375, %v662_v32  ;;  %v789_v52 = vadd.f32 %v773_v36, %v757_v33  ;;  %v670_v6 = vld [vmem:[#allocation2 + $0x68] sm:$0xff]  ;;  %v1050_v21 = vpack.c.bf16 %v672_v15, %v671_v13  ;;  %809 = vst [vmem:[%s1373_s15 + $0x40] sm:$0xff] %v793_v1  ;;  %810 = vst [vmem:[%s1373_s15 + $0x48] sm:$0xff] %v794_v2 }
 0x146   : > { %1054 = vst [vmem:[%s1368_s6 + $0x18] sm:$0xff] %v1030_v47   ;;  %v792_v60 = vadd.f32 %v776_v48, %v760_v43  ;;  %v1045_v9 = vpack.c.bf16 %v670_v6, %v669_v5  ;;  %v782_v12 = vmul.f32 0.2375, %v670_v6  ;;  %v797_v19 = vadd.f32 %v781_v11, %v765_v7  ;;  %807 = vst [vmem:[%s1373_s15 + $0x30] sm:$0xff] %v791_v59 }
 0x147   : > { %1053 = vst [vmem:[%s1368_s6 + $0x10] sm:$0xff] %v1025_v34   ;;  %v790_v58 = vadd.f32 %v774_v37, %v758_v35  ;;  %v784_v22 = vmul.f32 0.2375, %v672_v15  ;;  %805 = vst [vmem:[%s1373_s15 + $0x20] sm:$0xff] %v789_v52  ;;  %v799_v23 = vadd.f32 %v783_v18, %v767_v16 }
 0x148   : > { %1057 = vst [vmem:[%s1368_s6 + $0x30] sm:$0xff] %v1045_v9   ;;  %v798_v20 = vadd.f32 %v782_v12, %v766_v10  ;;  %808 = vst [vmem:[%s1373_s15 + $0x38] sm:$0xff] %v792_v60 }
 0x149   : > { %806 = vst [vmem:[%s1373_s15 + $0x28] sm:$0xff] %v790_v58  ;;  %811 = vst [vmem:[%s1373_s15 + $0x50] sm:$0xff] %v795_v8  ;;  %v800_v24 = vadd.f32 %v784_v22, %v768_v17 }
 0x14a   : > { %812 = vst [vmem:[%s1373_s15 + $0x58] sm:$0xff] %v796_v14  ;;  %1058 = vst [vmem:[%s1368_s6 + $0x38] sm:$0xff] %v1050_v21  }
 0x14b   : > { %813 = vst [vmem:[%s1373_s15 + $0x60] sm:$0xff] %v797_v19  ;;  %814 = vst [vmem:[%s1373_s15 + $0x68] sm:$0xff] %v798_v20 }
 0x14c   : > { %815 = vst [vmem:[%s1373_s15 + $0x70] sm:$0xff] %v799_v23  ;;  %816 = vst [vmem:[%s1373_s15 + $0x78] sm:$0xff] %v800_v24 }
 0x14d PF: > { %s15_s21 = sadd.s32 1, %s1250_s21   ;;  %s1467_s15 = smov %s1230_s16 }
 0x14e   : > { %p12_p13 = scmp.ge.s32.totalorder %s15_s21, 6   ;;  %s1468_s16 = smov %s1329_s28 }
 0x14f   : > { %s1469_s17 = smov %s1242_s19  ;;  %s1470_s18 = smov %s1246_s20 }
 0x150   : > { %s1471_s19 = smov %s1474_s22  ;;  %s1472_s20 = smov %s1478_s23 }
 0x151   :  { %14 = sbr.rel (!%p12_p13) target bundleno = 4 (0x4), region = 132 }

</bundles_post_ra>
